<compile_context>
chip_gen: v7x
topology: tpu7x:2x2x1
jax: 0.10.0
libtpu: 0.0.40
codegen_flags: <defaults>
</compile_context>

<pallas_src>
import jax
import jax.numpy as jnp
from jax.experimental import pallas as pl
from jax.experimental.pallas import tpu as pltpu


# ----------------------------------------------------------------------------
# Single fused kernel: 1x1 conv  ->  (permute + reshape + mean-pool, folded
# into a matmul against a constant matrix)  ->  2-layer MLP classifier.
# ----------------------------------------------------------------------------
def _fused_forward_kernel(x_ref, cw_ref, cb_ref, pool_ref,
                          w1_ref, b1_ref, w2_ref, b2_ref,
                          timg_ref, hid_ref, out_ref):
    # x_ref:    (B, Cin, HW)        input, HW = spectral*temporal (lane-dense)
    # cw_ref:   (Cout, Cin)         1x1 conv weight
    # cb_ref:   (Cout, 1)           1x1 conv bias
    # pool_ref: (HW, H)             constant: 1/(Cout*W) where f // W == h, else 0
    # w1_ref:   (H, Hd)  b1_ref: (1, Hd)
    # w2_ref:   (Hd, Nc) b2_ref: (1, Nc)
    # timg_ref: (B, Cout, HW)       transform_img (lane-dense; reshaped in wrapper)
    # hid_ref:  (B, Hd)             hidden state
    # out_ref:  (B, Nc)             logits
    B = x_ref.shape[0]
    cw = cw_ref[...]
    cb = cb_ref[...]

    # --- "pretrained" stand-in: 1x1 channel-mixing conv, all batches here ----
    for b in range(B):                                   # tiny static unroll (B=2)
        yb = jnp.dot(cw, x_ref[b], preferred_element_type=jnp.float32) + cb
        timg_ref[b] = yb                                 # (Cout, HW), 256-lane store

    # --- permute(0,1,3,2) + reshape(B, C*temporal, spectral) + mean(dim=1) ---
    # pooled[b, h] = mean_{c, w} transform_img[b, c, h, w]; the 1/(Cout*W)
    # scale is folded into the constant pooling matrix.
    t = timg_ref[...]                                    # (B, Cout, HW), still in VMEM
    chan_sum = jnp.sum(t, axis=1)                        # (B, HW): sum over channels
    pooled = jnp.dot(chan_sum, pool_ref[...],
                     preferred_element_type=jnp.float32)  # (B, H): sum over temporal, scaled

    # --- "AASIST" classifier stand-in: 2-layer MLP -> (hidden, logits) -------
    h = jnp.dot(pooled, w1_ref[...], preferred_element_type=jnp.float32) + b1_ref[...]
    h = jnp.maximum(h, 0.0)                              # ReLU
    hid_ref[...] = h
    out_ref[...] = (jnp.dot(h, w2_ref[...], preferred_element_type=jnp.float32)
                    + b2_ref[...])


# ----------------------------------------------------------------------------
# Full Model.forward (single pallas_call, no grid)
# ----------------------------------------------------------------------------
def model_forward(params, x, train=False):
    B, Cin, H, W = x.shape                 # H = spectral, W = temporal
    Cout = params["conv_w"].shape[0]
    Hd = params["w1"].shape[1]
    Nc = params["w2"].shape[1]
    HW = H * W

    x2 = x.reshape(B, Cin, HW)             # free contiguous reshape

    # Constant pooling matrix (compile-time folded under jit):
    # pool[f, h] = 1/(Cout*W) if f // W == h else 0, so
    # chan_sum @ pool == mean over (channel, temporal) per spectral bin.
    f_idx = jnp.arange(HW, dtype=jnp.int32)
    h_idx = jnp.arange(H, dtype=jnp.int32)
    pool_mat = ((f_idx[:, None] // W) == h_idx[None, :]).astype(jnp.float32)
    pool_mat = pool_mat * (1.0 / float(Cout * W))

    vmem_spec = pl.BlockSpec(memory_space=pltpu.MemorySpace.VMEM)

    timg_flat, hidden, output = pl.pallas_call(
        _fused_forward_kernel,
        out_shape=(
            jax.ShapeDtypeStruct((B, Cout, HW), jnp.float32),  # transform_img (flat)
            jax.ShapeDtypeStruct((B, Hd), jnp.float32),        # hidden state
            jax.ShapeDtypeStruct((B, Nc), jnp.float32),        # logits
        ),
        in_specs=[vmem_spec] * 8,
        out_specs=(vmem_spec, vmem_spec, vmem_spec),
    )(x2, params["conv_w"], params["conv_b"], pool_mat,
      params["w1"], params["b1"], params["w2"], params["b2"])

    transform_img = timg_flat.reshape(B, Cout, H, W)
    return output, transform_img, hidden


# ----------------------------------------------------------------------------
# Pure-JAX reference mirroring the PyTorch forward (for correctness check)
# ----------------------------------------------------------------------------
def model_forward_ref(params, x):
    B, Cin, H, W = x.shape
    cw, cb = params["conv_w"], params["conv_b"]
    timg = (jnp.einsum("oi,bihw->bohw", cw, x, precision="highest")
            + cb[None, :, :, None])                         # (B, Cout, H, W)
    newt = jnp.transpose(timg, (0, 1, 3, 2))                # (B, Cout, W, H)
    bs, ch, temporal, spectral = newt.shape
    viewed = newt.reshape(bs, ch * temporal, spectral)      # (B, C*W, H)
    pooled = jnp.mean(viewed, axis=1)                       # (B, H)
    h = jnp.maximum(
        jnp.dot(pooled, params["w1"], precision="highest") + params["b1"], 0.0)
    out = jnp.dot(h, params["w2"], precision="highest") + params["b2"]
    return out, timg, h


def init_params(key, cin=4, cout=4, spectral=16, hidden=32, num_classes=2):
    k = jax.random.split(key, 6)
    return {
        "conv_w": 0.1 * jax.random.normal(k[0], (cout, cin), jnp.float32),
        "conv_b": 0.1 * jax.random.normal(k[1], (cout, 1), jnp.float32),
        "w1": 0.1 * jax.random.normal(k[2], (spectral, hidden), jnp.float32),
        "b1": 0.1 * jax.random.normal(k[3], (1, hidden), jnp.float32),
        "w2": 0.1 * jax.random.normal(k[4], (hidden, num_classes), jnp.float32),
        "b2": 0.1 * jax.random.normal(k[5], (1, num_classes), jnp.float32),
    }


if __name__ == "__main__":
    key = jax.random.PRNGKey(0)
    k_x, k_p = jax.random.split(key)

    B, Cin, H, W = 2, 4, 16, 16            # NCHW; H=spectral, W=temporal
    x = jax.random.normal(k_x, (B, Cin, H, W), jnp.float32)
    params = init_params(k_p, cin=Cin, cout=4, spectral=H, hidden=32, num_classes=2)

    fwd = jax.jit(model_forward)
    output, transform_img, hidenstate = fwd(params, x)
    jax.block_until_ready((output, transform_img, hidenstate))

    assert output.shape == (B, 2)
    assert transform_img.shape == (B, 4, H, W)
    assert hidenstate.shape == (B, 32)

    # Numerical check against the pure-JAX reference of the same forward.
    ref_out, ref_timg, ref_hid = model_forward_ref(params, x)
    assert jnp.allclose(transform_img, ref_timg, atol=2e-3, rtol=2e-3)
    assert jnp.allclose(hidenstate, ref_hid, atol=2e-3, rtol=2e-3)
    assert jnp.allclose(output, ref_out, atol=2e-3, rtol=2e-3)

    print("KERNEL_OK")
</pallas_src>

<mosaic_0001>
module attributes {stable_mosaic.version = 11 : i64} {
  func.func @_fused_forward_kernel(%arg0: memref<2x4x256xf32, #tpu.memory_space<vmem>>, %arg1: memref<4x4xf32, #tpu.memory_space<vmem>>, %arg2: memref<4x1xf32, #tpu.memory_space<vmem>>, %arg3: memref<256x16xf32, #tpu.memory_space<vmem>>, %arg4: memref<16x32xf32, #tpu.memory_space<vmem>>, %arg5: memref<1x32xf32, #tpu.memory_space<vmem>>, %arg6: memref<32x2xf32, #tpu.memory_space<vmem>>, %arg7: memref<1x2xf32, #tpu.memory_space<vmem>>, %arg8: memref<2x4x256xf32, #tpu.memory_space<vmem>>, %arg9: memref<2x32xf32, #tpu.memory_space<vmem>>, %arg10: memref<2x2xf32, #tpu.memory_space<vmem>>) attributes {dimension_semantics = [], scalar_prefetch = 0 : i64, scratch_operands = 0 : i64, tpu.core_type = #tpu.core_type<tc>} {
    %c0 = arith.constant 0 : index
    %c0_0 = arith.constant 0 : index
    %0 = vector.load %arg1[%c0, %c0_0] : memref<4x4xf32, #tpu.memory_space<vmem>>, vector<4x4xf32>
    %c0_1 = arith.constant 0 : index
    %c0_2 = arith.constant 0 : index
    %1 = vector.load %arg2[%c0_1, %c0_2] : memref<4x1xf32, #tpu.memory_space<vmem>>, vector<4x1xf32>
    %c0_3 = arith.constant 0 : index
    %c0_4 = arith.constant 0 : index
    %c0_5 = arith.constant 0 : index
    %2 = vector.load %arg0[%c0_3, %c0_4, %c0_5] : memref<2x4x256xf32, #tpu.memory_space<vmem>>, vector<1x4x256xf32>
    %3 = vector.shape_cast %2 : vector<1x4x256xf32> to vector<4x256xf32>
    %cst = arith.constant dense<0.000000e+00> : vector<4x256xf32>
    %4 = tpu.matmul %0, %3, %cst {dimension_numbers = #tpu.dot_dimension_numbers<[1], [0], [0], [1], [0, 0, 1, 1], [], []>} : vector<4x4xf32>, vector<4x256xf32>, vector<4x256xf32> -> vector<4x256xf32>
    %5 = vector.broadcast %1 : vector<4x1xf32> to vector<4x256xf32>
    %6 = arith.addf %4, %5 : vector<4x256xf32>
    %c0_6 = arith.constant 0 : index
    %c0_7 = arith.constant 0 : index
    %c0_8 = arith.constant 0 : index
    %7 = vector.load %arg8[%c0_6, %c0_7, %c0_8] : memref<2x4x256xf32, #tpu.memory_space<vmem>>, vector<1x4x256xf32>
    %8 = vector.shape_cast %7 : vector<1x4x256xf32> to vector<4x256xf32>
    %9 = vector.shape_cast %6 : vector<4x256xf32> to vector<1x4x256xf32>
    tpu.vector_store %arg8[%c0_6, %c0_7, %c0_8], %9 {strides = array<i32>} : memref<2x4x256xf32, #tpu.memory_space<vmem>>, vector<1x4x256xf32>,
    %c1 = arith.constant 1 : index
    %c0_9 = arith.constant 0 : index
    %c0_10 = arith.constant 0 : index
    %10 = vector.load %arg0[%c1, %c0_9, %c0_10] : memref<2x4x256xf32, #tpu.memory_space<vmem>>, vector<1x4x256xf32>
    %11 = vector.shape_cast %10 : vector<1x4x256xf32> to vector<4x256xf32>
    %cst_11 = arith.constant dense<0.000000e+00> : vector<4x256xf32>
    %12 = tpu.matmul %0, %11, %cst_11 {dimension_numbers = #tpu.dot_dimension_numbers<[1], [0], [0], [1], [0, 0, 1, 1], [], []>} : vector<4x4xf32>, vector<4x256xf32>, vector<4x256xf32> -> vector<4x256xf32>
    %13 = vector.broadcast %1 : vector<4x1xf32> to vector<4x256xf32>
    %14 = arith.addf %12, %13 : vector<4x256xf32>
    %c1_12 = arith.constant 1 : index
    %c0_13 = arith.constant 0 : index
    %c0_14 = arith.constant 0 : index
    %15 = vector.load %arg8[%c1_12, %c0_13, %c0_14] : memref<2x4x256xf32, #tpu.memory_space<vmem>>, vector<1x4x256xf32>
    %16 = vector.shape_cast %15 : vector<1x4x256xf32> to vector<4x256xf32>
    %17 = vector.shape_cast %14 : vector<4x256xf32> to vector<1x4x256xf32>
    tpu.vector_store %arg8[%c1_12, %c0_13, %c0_14], %17 {strides = array<i32>} : memref<2x4x256xf32, #tpu.memory_space<vmem>>, vector<1x4x256xf32>,
    %c0_15 = arith.constant 0 : index
    %c0_16 = arith.constant 0 : index
    %c0_17 = arith.constant 0 : index
    %18 = vector.load %arg8[%c0_15, %c0_16, %c0_17] : memref<2x4x256xf32, #tpu.memory_space<vmem>>, vector<2x4x256xf32>
    %cst_18 = arith.constant dense<0.000000e+00> : vector<2x256xf32>
    %19 = vector.multi_reduction <add>, %18, %cst_18 [1] : vector<2x4x256xf32> to vector<2x256xf32>
    %c0_19 = arith.constant 0 : index
    %c0_20 = arith.constant 0 : index
    %20 = vector.load %arg3[%c0_19, %c0_20] : memref<256x16xf32, #tpu.memory_space<vmem>>, vector<256x16xf32>
    %cst_21 = arith.constant dense<0.000000e+00> : vector<2x16xf32>
    %21 = tpu.matmul %19, %20, %cst_21 {dimension_numbers = #tpu.dot_dimension_numbers<[1], [0], [0], [1], [0, 0, 1, 1], [], []>} : vector<2x256xf32>, vector<256x16xf32>, vector<2x16xf32> -> vector<2x16xf32>
    %c0_22 = arith.constant 0 : index
    %c0_23 = arith.constant 0 : index
    %22 = vector.load %arg4[%c0_22, %c0_23] : memref<16x32xf32, #tpu.memory_space<vmem>>, vector<16x32xf32>
    %cst_24 = arith.constant dense<0.000000e+00> : vector<2x32xf32>
    %23 = tpu.matmul %21, %22, %cst_24 {dimension_numbers = #tpu.dot_dimension_numbers<[1], [0], [0], [1], [0, 0, 1, 1], [], []>} : vector<2x16xf32>, vector<16x32xf32>, vector<2x32xf32> -> vector<2x32xf32>
    %c0_25 = arith.constant 0 : index
    %c0_26 = arith.constant 0 : index
    %24 = vector.load %arg5[%c0_25, %c0_26] : memref<1x32xf32, #tpu.memory_space<vmem>>, vector<1x32xf32>
    %25 = vector.broadcast %24 : vector<1x32xf32> to vector<2x32xf32>
    %26 = arith.addf %23, %25 : vector<2x32xf32>
    %cst_27 = arith.constant 0.000000e+00 : f32
    %27 = vector.broadcast %cst_27 : f32 to vector<2x32xf32>
    %28 = arith.maximumf %26, %27 : vector<2x32xf32>
    %c0_28 = arith.constant 0 : index
    %c0_29 = arith.constant 0 : index
    %29 = vector.load %arg9[%c0_28, %c0_29] : memref<2x32xf32, #tpu.memory_space<vmem>>, vector<2x32xf32>
    tpu.vector_store %arg9[%c0_28, %c0_29], %28 {strides = array<i32>} : memref<2x32xf32, #tpu.memory_space<vmem>>, vector<2x32xf32>,
    %c0_30 = arith.constant 0 : index
    %c0_31 = arith.constant 0 : index
    %30 = vector.load %arg6[%c0_30, %c0_31] : memref<32x2xf32, #tpu.memory_space<vmem>>, vector<32x2xf32>
    %cst_32 = arith.constant dense<0.000000e+00> : vector<2x2xf32>
    %31 = tpu.matmul %28, %30, %cst_32 {dimension_numbers = #tpu.dot_dimension_numbers<[1], [0], [0], [1], [0, 0, 1, 1], [], []>} : vector<2x32xf32>, vector<32x2xf32>, vector<2x2xf32> -> vector<2x2xf32>
    %c0_33 = arith.constant 0 : index
    %c0_34 = arith.constant 0 : index
    %32 = vector.load %arg7[%c0_33, %c0_34] : memref<1x2xf32, #tpu.memory_space<vmem>>, vector<1x2xf32>
    %33 = vector.broadcast %32 : vector<1x2xf32> to vector<2x2xf32>
    %34 = arith.addf %31, %33 : vector<2x2xf32>
    %c0_35 = arith.constant 0 : index
    %c0_36 = arith.constant 0 : index
    %35 = vector.load %arg10[%c0_35, %c0_36] : memref<2x2xf32, #tpu.memory_space<vmem>>, vector<2x2xf32>
    tpu.vector_store %arg10[%c0_35, %c0_36], %34 {strides = array<i32>} : memref<2x2xf32, #tpu.memory_space<vmem>>, vector<2x2xf32>,
    return
  }
}

</mosaic_0001>

<bundles_post_ra>
// kernel: model_forward.1
= control target key start
LH: loop header
LB: loop body
LE: loop exit
PB: predicated region body
PF: predicated region fallthrough
CT: control target
= control target key end

     0   :  { %16 = vsyncpa [#allocation3], 0  ;;  %vm48_vm0 = vcmask 1043456   ;;  %v739_v2 = vmov 0.0   ;;  %s974_s0 = inlined_call_operand.vmem [shape: f32[2,4,256], index: 0, kind: input, shape index: {}]   ;;  %s975_s1 = inlined_call_operand.vmem [shape: f32[4,4], index: 1, kind: input, shape index: {}]   ;;  %s976_s2 = inlined_call_operand.vmem [shape: f32[4,1], index: 2, kind: input, shape index: {}]   ;;  %s977_s3 = inlined_call_operand.vmem [shape: f32[256,16], index: 3, kind: input, shape index: {}]   ;;  %s978_s4 = inlined_call_operand.vmem [shape: f32[16,32], index: 4, kind: input, shape index: {}]   ;;  %s979_s5 = inlined_call_operand.vmem [shape: f32[1,32], index: 5, kind: input, shape index: {}]   ;;  %s980_s6 = inlined_call_operand.vmem [shape: f32[32,2], index: 6, kind: input, shape index: {}]   ;;  %s981_s7 = inlined_call_operand.vmem [shape: f32[1,2], index: 7, kind: input, shape index: {}]   ;;  %s982_s8 = inlined_call_operand.vmem [shape: f32[2,4,256], index: 8, kind: output, shape index: {0}]   ;;  %s983_s9 = inlined_call_operand.hbm [shape: f32[2,32], index: 9, kind: output, shape index: {1}]   ;;  %s984_s10 = inlined_call_operand.hbm [shape: f32[2,2], index: 10, kind: output, shape index: {2}]  }
   0x1   :  { %v36_v0 = vld [vmem:[%s974_s0] sm:$0xff]  ;;  %117 = vmatprep.mubr.f32.mxu1 %v739_v2  ;;  %v569_v3 = vld [vmem:[%s974_s0 + $0x8] sm:$0xff] }
   0x2   :  { %v43_v1 = vcombine.high %v36_v0, %v36_v0  ;;  %v35_v4 = vld [vmem:[%s976_s2] sm:$0xf] }
   0x3   :  { %17 = vsyncpa [#allocation5], 0  ;;  %v34_v5 = vld [vmem:[%s975_s1] sm:$0xf]  ;;  %vm44_vm1 = vcmask 31744   ;;  %v132_v6 = vcombine.high %v569_v3, %v569_v3  ;;  %v740_v7 = vmov 0  }
   0x4   :  { %686 = vset.pattern.permute.xlu0 %v740_v7  ;;  %566 = vmatprep.subr.msk.mxu1 %vm48_vm0, %v43_v1  ;;  %v266_v8 = vld [vmem:[%s977_s3 + $0x80] sm:$0xff]  ;;  %v267_v9 = vld [vmem:[%s977_s3 + $0x88] sm:$0xff]  ;;  %v268_v14 = vld [vmem:[%s977_s3 + $0x90] sm:$0xff]  ;;  %vm286_vm2 = vcmask 1041409   ;;  %vm742_vm3 = vmmov 0   ;;  %vm370_vm4 = vcmask 130048  }
   0x5   :  { %39 = vperm.xlu0 %686, %v35_v4   ;;  %567 = vmatpush1.msk.msra.mxu1 %vm48_vm0, %v36_v0  ;;  %v639_v10 = vpack.c.bf16 %v267_v9, %v266_v8  ;;  %v250_v11 = vld [vmem:[%s977_s3] sm:$0xff]  ;;  %v251_v12 = vld [vmem:[%s977_s3 + $0x8] sm:$0xff]  ;;  %v269_v15 = vld [vmem:[%s977_s3 + $0x98] sm:$0xff]  ;;  %vm458_vm5 = vcmask 261120   ;;  %vm445_vm6 = vcmask 254976   ;;  %s743_s28 = smov [#allocation2]  }
   0x6   :  { %568 = vmatmul.mubr.msk.f32.vlgmr.msra.gmra.mrb[0].mxu1 %vm44_vm1, %v34_v5  ;;  %570 = vmatprep.subr.msk.mxu1 %vm48_vm0, %v132_v6  ;;  %v641_v13 = vpack.c.bf16 %v251_v12, %v250_v11  ;;  %v643_v16 = vpack.c.bf16 %v269_v15, %v268_v14  ;;  %v252_v17 = vld [vmem:[%s977_s3 + $0x10] sm:$0xff]  ;;  %v253_v18 = vld [vmem:[%s977_s3 + $0x18] sm:$0xff]  ;;  %v270_v20 = vld [vmem:[%s977_s3 + $0xa0] sm:$0xff]  ;;  %s542_s29 = sshll.u32 %s743_s28, 4  ;;  %s543_s29 = int_to_ptr.vmem [resolvable:$true] %s542_s29 }
   0x7   :  { %571 = vmatpush1.msk.msra.mxu1 %vm48_vm0, %v569_v3  ;;  %201 = vmatprep.mubr.f32.mxu1 %v739_v2  ;;  %v645_v19 = vpack.c.bf16 %v253_v18, %v252_v17  ;;  %v271_v21 = vld [vmem:[%s977_s3 + $0xa8] sm:$0xff]  ;;  %v254_v23 = vld [vmem:[%s977_s3 + $0x20] sm:$0xff]  ;;  %v272_v26 = vld [vmem:[%s977_s3 + $0xb0] sm:$0xff]  ;;  %s691_s30 = scalar_lea.vmem %s543_s29, 32  ;;  %p696_p1 = scmp.lt.s32.totalorder %s543_s29, %s543_s29 }
   0x8   :  { %640 = vmatprep.subr.bf16.mxu0 %v639_v10  ;;  %v647_v22 = vpack.c.bf16 %v271_v21, %v270_v20  ;;  %v255_v24 = vld [vmem:[%s977_s3 + $0x28] sm:$0xff]  ;;  %v273_v27 = vld [vmem:[%s977_s3 + $0xb8] sm:$0xff]  ;;  %v256_v29 = vld [vmem:[%s977_s3 + $0x30] sm:$0xff]  ;;  %p692_p0 = scmp.ne.s32.totalorder %s543_s29, %s691_s30  ;;  %p697_p2 = scmp.lt.s32.totalorder %s691_s30, %s691_s30 }
   0x9   :  { %642 = vmatpush3.bf16.msra.mxu0 %v641_v13  ;;  %v649_v25 = vpack.c.bf16 %v255_v24, %v254_v23  ;;  %v651_v28 = vpack.c.bf16 %v273_v27, %v272_v26  ;;  %v257_v30 = vld [vmem:[%s977_s3 + $0x38] sm:$0xff]  ;;  %v274_v32 = vld [vmem:[%s977_s3 + $0xc0] sm:$0xff]  ;;  %v275_v33 = vld [vmem:[%s977_s3 + $0xc8] sm:$0xff] }
   0xa   :  { %572 = vmatmul.mubr.msk.f32.vlgmr.msra.gmra.mrb[2].mxu1 %vm44_vm1, %v34_v5  ;;  %644 = vmatprep.subr.bf16.mxu0 %v643_v16  ;;  %v653_v31 = vpack.c.bf16 %v257_v30, %v256_v29  ;;  %v655_v34 = vpack.c.bf16 %v275_v33, %v274_v32  ;;  %v258_v35 = vld [vmem:[%s977_s3 + $0x40] sm:$0xff]  ;;  %v259_v36 = vld [vmem:[%s977_s3 + $0x48] sm:$0xff]  ;;  %v276_v38 = vld [vmem:[%s977_s3 + $0xd0] sm:$0xff]  ;;  %p698_p3 = por %p697_p2, %p696_p1 }
   0xb   :  { %v657_v37 = vpack.c.bf16 %v259_v36, %v258_v35  ;;  %v277_v39 = vld [vmem:[%s977_s3 + $0xd8] sm:$0xff]  ;;  %v260_v40 = vld [vmem:[%s977_s3 + $0x50] sm:$0xff]  ;;  %v278_v43 = vld [vmem:[%s977_s3 + $0xe0] sm:$0xff]  ;;  %625 = vmatprep.mubr.msk.f32.mxu1 %vm742_vm3, %v739_v2 }
   0xc   :  { %v659_v41 = vpack.c.bf16 %v277_v39, %v276_v38  ;;  %v261_v42 = vld [vmem:[%s977_s3 + $0x58] sm:$0xff]  ;;  %v279_v44 = vld [vmem:[%s977_s3 + $0xe8] sm:$0xff]  ;;  %v262_v47 = vld [vmem:[%s977_s3 + $0x60] sm:$0xff]  ;;  %v741_v39 = vmov 0.0|0.0   ;;  %p699_p4 = pnand %p698_p3, %p692_p0 }
   0xd   :  { %646 = vmatpush3.bf16.msra.mxu0 %v645_v19  ;;  %v661_v45 = vpack.c.bf16 %v261_v42, %v260_v40  ;;  %v663_v46 = vpack.c.bf16 %v279_v44, %v278_v43  ;;  %v263_v48 = vld [vmem:[%s977_s3 + $0x68] sm:$0xff]  ;;  %v280_v49 = vld [vmem:[%s977_s3 + $0xf0] sm:$0xff]  ;;  %v281_v50 = vld [vmem:[%s977_s3 + $0xf8] sm:$0xff]  ;;  %671 = vmatprep.subr.bf16.mxu1 %v741_v39 }
   0xe   :  { %648 = vmatprep.subr.bf16.mxu0 %v647_v22  ;;  %v665_v51 = vpack.c.bf16 %v263_v48, %v262_v47  ;;  %v667_v52 = vpack.c.bf16 %v281_v50, %v280_v49  ;;  %v264_v53 = vld [vmem:[%s977_s3 + $0x70] sm:$0xff]  ;;  %v265_v54 = vld [vmem:[%s977_s3 + $0x78] sm:$0xff]  ;;  %v361_v36 = vld [vmem:[%s978_s4] sm:$0xff] }
   0xf   :  { %v669_v55 = vpack.c.bf16 %v265_v54, %v264_v53  ;;  %v447_v40 = vld [vmem:[%s980_s6] sm:$0xff]  ;;  %v450_v47 = vld [vmem:[%s980_s6 + $0x18] sm:$0xff] }
  0x10   :  { %v574_v49 = vld [vmem:[%s979_s5] ss:$0 sm:$0xff] }
  0x11   :  { %650 = vmatpush3.bf16.msra.mxu0 %v649_v25 }
  0x12   :  { %652 = vmatprep.subr.bf16.mxu0 %v651_v28 }
  0x15   :  { %654 = vmatpush3.bf16.msra.mxu0 %v653_v31 }
  0x16   :  { %656 = vmatprep.subr.bf16.mxu0 %v655_v34 }
  0x19   :  { %658 = vmatpush3.bf16.msra.mxu0 %v657_v37  ;;  %v362_v37 = vld [vmem:[%s978_s4 + $0x8] sm:$0xff] }
  0x1a   :  { %660 = vmatprep.subr.bf16.mxu0 %v659_v41  ;;  %v672_v38 = vpack.c.bf16 %v362_v37, %v361_v36  ;;  %v448_v41 = vld [vmem:[%s980_s6 + $0x8] sm:$0xff] }
  0x1b   :  { %v675_v44 = vpack.c.bf16 %v448_v41, %v447_v40 }
  0x1c   :  { %673 = vmatpush3.bf16.msra.mxu1 %v672_v38 }
  0x1d   :  { %662 = vmatpush3.bf16.msra.mxu0 %v661_v45  ;;  %674 = vmatprep.subr.bf16.mxu1 %v741_v39 }
  0x1e   :  { %664 = vmatprep.subr.bf16.mxu0 %v663_v46  ;;  %v449_v46 = vld [vmem:[%s980_s6 + $0x10] sm:$0xff] }
  0x1f   :  { %v678_v48 = vpack.c.bf16 %v450_v47, %v449_v46 }
  0x21   :  { %666 = vmatpush3.bf16.msra.mxu0 %v665_v51 }
  0x22   :  { %668 = vmatprep.subr.bf16.mxu0 %v667_v52 }
  0x25   :  { %670 = vmatpush3.bf16.msra.mxu0 %v669_v55 }
  0x84   :  { %v40_v56 = vpop.permute.xlu0 %39 }
  0xd9   :  { %v119_v57 = vpop.f32.mrb[0].mxu1 }
  0xda   :  { %v120_v58 = vadd.f32 %v119_v57, %v40_v56  ;;  %v121_v59 = vpop.f32.mrb[1].mxu1 }
  0xdb   :  { %v122_v60 = vadd.f32 %v121_v59, %v40_v56 }
  0xdd   :  { %v126_v61 = vcombine.low %v120_v58, %v122_v60  ;;  %v203_v62 = vpop.f32.mrb[2].mxu1  ;;  %v689_v3 = vcombine.low %v122_v60, %v122_v60 }
  0xde   :  { %v204_v63 = vadd.f32 %v203_v62, %v40_v56  ;;  %v205_v0 = vpop.f32.mrb[3].mxu1 }
  0xdf   :  { %128 = vst [vmem:[%s982_s8] sm:$0xff] %v126_v61  ;;  %v206_v1 = vadd.f32 %v205_v0, %v40_v56  ;;  %v222_v4 = vsel %vm48_vm0, %v126_v61, 0.0  ;;  %v229_v7 = vsel %vm48_vm0, %v689_v3, 0.0 }
  0xe0   :  { %v223_v5 = vrot.slane %v222_v4, 4  ;;  %v230_v8 = vrot.slane %v229_v7, 4 }
  0xe1   :  { %v210_v6 = vcombine.low %v204_v63, %v206_v1  ;;  %v690_v10 = vcombine.low %v206_v1, %v206_v1 }
  0xe2   :  { %v224_v9 = vadd.f32 %v223_v5, %v222_v4  ;;  %v231_v12 = vadd.f32 %v230_v8, %v229_v7 }
  0xe3   :  { %573 = vst [vmem:[%s982_s8 + $0x8] sm:$0xff] %v210_v6  ;;  %v236_v11 = vsel %vm48_vm0, %v210_v6, 0.0  ;;  %v243_v15 = vsel %vm48_vm0, %v690_v10, 0.0 }
  0xe4   :  { %v225_v13 = vrot.slane %v224_v9, 2  ;;  %v237_v14 = vrot.slane %v236_v11, 4  ;;  %v232_v16 = vrot.slane %v231_v12, 2  ;;  %v244_v17 = vrot.slane %v243_v15, 4 }
  0xe6   :  { %v226_v18 = vadd.f32 %v225_v13, %v224_v9  ;;  %v238_v19 = vadd.f32 %v237_v14, %v236_v11  ;;  %v233_v20 = vadd.f32 %v232_v16, %v231_v12  ;;  %v245_v21 = vadd.f32 %v244_v17, %v243_v15 }
  0xe8   :  { %v239_v22 = vrot.slane %v238_v19, 2  ;;  %v246_v23 = vrot.slane %v245_v21, 2  ;;  %v227_v24 = vrot.slane %v226_v18, 1  ;;  %v234_v26 = vrot.slane %v233_v20, 1 }
  0xea   :  { %v240_v25 = vadd.f32 %v239_v22, %v238_v19  ;;  %v247_v27 = vadd.f32 %v246_v23, %v245_v21  ;;  %v228_v30 = vadd.f32 %v227_v24, %v226_v18  ;;  %v235_v32 = vadd.f32 %v234_v26, %v233_v20 }
  0xec   :  { %v241_v28 = vrot.slane %v240_v25, 1  ;;  %v248_v29 = vrot.slane %v247_v27, 1 }
  0xee   :  { %v242_v31 = vadd.f32 %v241_v28, %v240_v25  ;;  %v249_v33 = vadd.f32 %v248_v29, %v247_v27 }
  0xf0   :  { %v287_v34 = vsel %vm286_vm2, %v242_v31, %v228_v30  ;;  %v288_v35 = vsel %vm286_vm2, %v249_v33, %v235_v32 }
  0xf1   :  { %355 = vmatprep.mubr.f32.mxu0 %v288_v35 }
  0xf2   :  { %356 = vmatmul.mubr.f32.vlgmr.msra.gmra.mrb[0].mxu0 %v287_v34 }
 0x1c5   :  { %v610_v42 = vpop.f32.mrb[0].mxu0 }
 0x1c6   :  { %v611_v43 = vpop.f32.mrb[1].mxu0 }
 0x1c7   :  { %v612_v45 = vadd.f32 %v611_v43, %v610_v42 }
 0x1c9   :  { %626 = vmatmul.mubr.msk.f32.vlgmr.msra.gmra.mrb[4].mxu1 %vm370_vm4, %v612_v45 }
 0x1ca   :  { %676 = vmatpush3.bf16.msra.mxu1 %v675_v44  ;;  %636 = vmatprep.mubr.msk.f32.mxu1 %vm742_vm3, %v739_v2 }
 0x1cb   :  { %677 = vmatprep.subr.bf16.mxu1 %v741_v39 }
 0x1ce   :  { %679 = vmatpush3.bf16.msra.mxu1 %v678_v48 }
 0x29c   :  { %v440_v50 = vpop.f32.mrb[4].mxu1 }
 0x29d   :  { %v441_v51 = vadd.f32 %v574_v49, %v440_v50  ;;  %v627_v52 = vpop.f32.mrb[5].mxu1 }
 0x29f   :  { %v444_v2 = vmax.f32 %v441_v51, 0.0 }
 0x2a1   :  { %637 = vmatmul.mubr.msk.f32.vlgmr.msra.gmra.mrb[6].mxu1 %vm458_vm5, %v444_v2  ;;  %446 = vst.msk [vmem:[#allocation2] sm:$0x3] %vm445_vm6, %v444_v2 }
 0x2a2   :  { %702 = shalt.err (!%p699_p4)
}
 0x2a3   :  { %s703_s11 = scalar_lea.hbm %s983_s9, 32 }
 0x2a4   :  { %p704_p5 = scmp.ne.s32.totalorder %s983_s9, %s703_s11  ;;  %p707_p6 = scmp.lt.u32.totalorder %s703_s11, %s983_s9 }
 0x2a6   :  { %p709_p7 = pnand %p707_p6, %p704_p5 }
 0x2a8   :  { %712 = shalt.err (!%p709_p7)
}
 0x2a9   :  { %545 = dma.vmem_to_hbm [thread:$0]  %s543_s29, 32, %s983_s9, [#allocation3]   ;;  %v576_v53 = vld [vmem:[%s981_s7] ss:$0 sm:$0xff]  ;;  %vm532_vm7 = vcmask 9216  }
 0x2aa   :  { %s744_s8 = smov [#allocation4]  }
 0x2ab   :  { %s552_s19 = sshll.u32 %s744_s8, 4  ;;  %s553_s19 = int_to_ptr.vmem [resolvable:$true] %s552_s19 }
 0x2ac   :  { %s713_s20 = scalar_lea.vmem %s553_s19, 32  ;;  %p718_p9 = scmp.lt.s32.totalorder %s553_s19, %s553_s19 }
 0x2ad   :  { %p714_p8 = scmp.ne.s32.totalorder %s553_s19, %s713_s20  ;;  %p719_p10 = scmp.lt.s32.totalorder %s713_s20, %s713_s20 }
 0x2af   :  { %p720_p11 = por %p719_p10, %p718_p9 }
 0x2b1   :  { %p721_p12 = pnand %p720_p11, %p714_p8 }
 0x374   :  { %v528_v54 = vpop.f32.mrb[6].mxu1 }
 0x375   :  { %v529_v55 = vadd.f32 %v576_v53, %v528_v54  ;;  %v638_v56 = vpop.f32.mrb[7].mxu1 }
 0x377   :  { %533 = vst.msk [vmem:[#allocation4] sm:$0x3] %vm532_vm7, %v529_v55 }
 0x378   :  { %724 = shalt.err (!%p721_p12)
}
 0x379   :  { %s725_s2 = scalar_lea.hbm %s984_s10, 32 }
 0x37a   :  { %p726_p13 = scmp.ne.s32.totalorder %s984_s10, %s725_s2  ;;  %p729_p0 = scmp.lt.u32.totalorder %s725_s2, %s984_s10 }
 0x37c   :  { %p731_p1 = pnand %p729_p0, %p726_p13 }
 0x37e   :  { %734 = shalt.err (!%p731_p1)
}
 0x37f   :  { %555 = dma.vmem_to_hbm [thread:$0]  %s553_s19, 32, %s984_s10, [#allocation5]  }
 0x380   :  { %735 = dma.done.wait [#allocation3], 32  }
 0x381   :  { %736 = vsyncadd [#allocation3], 4294967264 }
 0x382   :  { %737 = dma.done.wait [#allocation5], 32  }
 0x383   :  { %738 = vsyncadd [#allocation5], 4294967264 }
 0x384   :  { %564 = vsyncpa [#allocation3], 1 }
 0x385   :  { %565 = vsyncpa [#allocation5], 1 }

</bundles_post_ra>
